<compile_context>
chip_gen: v6e
topology: v6e:2x2x1
jax: 0.10.0
libtpu: 0.0.40
codegen_flags: <defaults>
</compile_context>

<pallas_src>
import functools

import jax
import jax.numpy as jnp
from jax.experimental import pallas as pl
from jax.experimental.pallas import tpu as pltpu

_C = 13  # in_channels of the aggregator conv


def _agg_kernel(w_ref, b_ref, x_ref, o_ref):
    # w_ref: (13,) f32 in SMEM      (conv weight, squeezed)
    # b_ref: (1,)  f32 in SMEM      (conv bias)
    # x_ref: (TB, 13, TL) in VMEM   (input tile)
    # o_ref: (TB, TL)     in VMEM   (output tile)
    acc = x_ref[:, 0, :].astype(jnp.float32) * w_ref[0]
    for c in range(1, _C):  # static 13-step unrolled VPU MAC, f32 accumulation
        acc = acc + x_ref[:, c, :].astype(jnp.float32) * w_ref[c]
    o_ref[...] = (acc + b_ref[0]).astype(o_ref.dtype)


def _round_up(x, m):
    return ((x + m - 1) // m) * m


@functools.partial(jax.jit, static_argnames=("tb", "tl"))
def weighted_aggregator(hidden_states, weight, bias, *, tb=8, tl=8192):
    """hidden_states: (B, 13, L), weight: (1, 13, 1), bias: (1,) -> (B, L)."""
    B, C, L = hidden_states.shape
    assert C == _C

    w_vec = weight.reshape(C).astype(jnp.float32)  # (13,) scalars in SMEM
    b_vec = bias.reshape(1).astype(jnp.float32)    # (1,)  scalar in SMEM

    # --- tile selection (no wrapper pad: Pallas masks boundary blocks) ---
    if B < 8:
        tb = B  # block dim equal to full array dim is exempt from the sublane rule
    # v7x dual-TC occupancy: if the batch axis gives a single row of blocks, split L
    # into >= 4 blocks so both TensorCores get work (no-op on v5e/v6e).
    if B <= tb:
        tl = min(tl, max(128, _round_up(pl.cdiv(L, 4), 128)))
    tl = min(tl, _round_up(L, 128))
    if tl >= L:
        tl = L  # single block along L; full-dim block is exempt from the 128 rule

    grid = (pl.cdiv(B, tb), pl.cdiv(L, tl))

    return pl.pallas_call(
        _agg_kernel,
        out_shape=jax.ShapeDtypeStruct((B, L), hidden_states.dtype),
        grid_spec=pltpu.PrefetchScalarGridSpec(
            num_scalar_prefetch=0,
            grid=grid,
            in_specs=[
                pl.BlockSpec(memory_space=pltpu.MemorySpace.SMEM),   # weight (13,)
                pl.BlockSpec(memory_space=pltpu.MemorySpace.SMEM),   # bias (1,)
                pl.BlockSpec((tb, C, tl), lambda b, l: (b, 0, l)),   # input tile
            ],
            out_specs=pl.BlockSpec((tb, tl), lambda b, l: (b, l)),
        ),
        compiler_params=pltpu.CompilerParams(
            dimension_semantics=("parallel", "parallel"),
            vmem_limit_bytes=32 * 1024 * 1024,  # headroom for double-buffered 3.3 MiB tiles on v5e
        ),
    )(w_vec, b_vec, hidden_states)


if __name__ == "__main__":
    key = jax.random.PRNGKey(0)
    k_x, k_w, k_b, k_x2 = jax.random.split(key, 4)

    C = _C
    # Deterministic synthetic Conv1d(13, 1, 1) parameters (same shapes as nn.Conv1d).
    weight = jax.random.normal(k_w, (1, C, 1), dtype=jnp.float32) * 0.1
    bias = jax.random.normal(k_b, (1,), dtype=jnp.float32) * 0.1

    # Case 1: lane-aligned sequence length, small batch (tb = B path).
    B1, L1 = 2, 512
    x1 = jax.random.normal(k_x, (B1, C, L1), dtype=jnp.float32)
    out1 = jax.block_until_ready(weighted_aggregator(x1, weight, bias))
    ref1 = jnp.einsum("bcl,c->bl", x1, weight.reshape(C)) + bias[0]
    assert out1.shape == (B1, L1)
    assert jnp.allclose(out1, ref1, atol=1e-5, rtol=1e-5)

    # Case 2: unaligned B / L (exercises boundary-block masking, no wrapper pad).
    B2, L2 = 3, 300
    x2 = jax.random.normal(k_x2, (B2, C, L2), dtype=jnp.float32)
    out2 = jax.block_until_ready(weighted_aggregator(x2, weight, bias))
    ref2 = jnp.einsum("bcl,c->bl", x2, weight.reshape(C)) + bias[0]
    assert out2.shape == (B2, L2)
    assert jnp.allclose(out2, ref2, atol=1e-5, rtol=1e-5)

    print("KERNEL_OK")
</pallas_src>

<mosaic_0001>
module attributes {stable_mosaic.version = 11 : i64} {
  func.func @_agg_kernel(%arg0: i32, %arg1: i32, %arg2: memref<13xf32, #tpu.memory_space<smem>>, %arg3: memref<1xf32, #tpu.memory_space<smem>>, %arg4: memref<2x13x128xf32, #tpu.memory_space<vmem>>, %arg5: memref<2x128xf32, #tpu.memory_space<vmem>>) attributes {dimension_semantics = [#tpu.dimension_semantics<parallel>, #tpu.dimension_semantics<parallel>], iteration_bounds = array<i64: 1, 4>, scalar_prefetch = 0 : i64, scratch_operands = 0 : i64, tpu.core_type = #tpu.core_type<tc>, window_params = [{transform_indices = @transform_0, window_bounds = array<i64: 13>}, {transform_indices = @transform_1, window_bounds = array<i64: 1>}, {transform_indices = @transform_2, window_bounds = array<i64: 2, 13, 128>}, {transform_indices = @transform_3, window_bounds = array<i64: 2, 128>}]} {
    %c0 = arith.constant 0 : index
    %c0_0 = arith.constant 0 : index
    %c0_1 = arith.constant 0 : index
    %0 = vector.load %arg4[%c0, %c0_0, %c0_1] : memref<2x13x128xf32, #tpu.memory_space<vmem>>, vector<2x1x128xf32>
    %1 = vector.shape_cast %0 : vector<2x1x128xf32> to vector<2x128xf32>
    %c0_2 = arith.constant 0 : index
    %2 = memref.load %arg2[%c0_2] : memref<13xf32, #tpu.memory_space<smem>>
    %3 = vector.broadcast %2 : f32 to vector<2x128xf32>
    %4 = arith.mulf %1, %3 : vector<2x128xf32>
    %c0_3 = arith.constant 0 : index
    %c1 = arith.constant 1 : index
    %c0_4 = arith.constant 0 : index
    %5 = vector.load %arg4[%c0_3, %c1, %c0_4] : memref<2x13x128xf32, #tpu.memory_space<vmem>>, vector<2x1x128xf32>
    %6 = vector.shape_cast %5 : vector<2x1x128xf32> to vector<2x128xf32>
    %c1_5 = arith.constant 1 : index
    %7 = memref.load %arg2[%c1_5] : memref<13xf32, #tpu.memory_space<smem>>
    %8 = vector.broadcast %7 : f32 to vector<2x128xf32>
    %9 = arith.mulf %6, %8 : vector<2x128xf32>
    %10 = arith.addf %4, %9 : vector<2x128xf32>
    %c0_6 = arith.constant 0 : index
    %c2 = arith.constant 2 : index
    %c0_7 = arith.constant 0 : index
    %11 = vector.load %arg4[%c0_6, %c2, %c0_7] : memref<2x13x128xf32, #tpu.memory_space<vmem>>, vector<2x1x128xf32>
    %12 = vector.shape_cast %11 : vector<2x1x128xf32> to vector<2x128xf32>
    %c2_8 = arith.constant 2 : index
    %13 = memref.load %arg2[%c2_8] : memref<13xf32, #tpu.memory_space<smem>>
    %14 = vector.broadcast %13 : f32 to vector<2x128xf32>
    %15 = arith.mulf %12, %14 : vector<2x128xf32>
    %16 = arith.addf %10, %15 : vector<2x128xf32>
    %c0_9 = arith.constant 0 : index
    %c3 = arith.constant 3 : index
    %c0_10 = arith.constant 0 : index
    %17 = vector.load %arg4[%c0_9, %c3, %c0_10] : memref<2x13x128xf32, #tpu.memory_space<vmem>>, vector<2x1x128xf32>
    %18 = vector.shape_cast %17 : vector<2x1x128xf32> to vector<2x128xf32>
    %c3_11 = arith.constant 3 : index
    %19 = memref.load %arg2[%c3_11] : memref<13xf32, #tpu.memory_space<smem>>
    %20 = vector.broadcast %19 : f32 to vector<2x128xf32>
    %21 = arith.mulf %18, %20 : vector<2x128xf32>
    %22 = arith.addf %16, %21 : vector<2x128xf32>
    %c0_12 = arith.constant 0 : index
    %c4 = arith.constant 4 : index
    %c0_13 = arith.constant 0 : index
    %23 = vector.load %arg4[%c0_12, %c4, %c0_13] : memref<2x13x128xf32, #tpu.memory_space<vmem>>, vector<2x1x128xf32>
    %24 = vector.shape_cast %23 : vector<2x1x128xf32> to vector<2x128xf32>
    %c4_14 = arith.constant 4 : index
    %25 = memref.load %arg2[%c4_14] : memref<13xf32, #tpu.memory_space<smem>>
    %26 = vector.broadcast %25 : f32 to vector<2x128xf32>
    %27 = arith.mulf %24, %26 : vector<2x128xf32>
    %28 = arith.addf %22, %27 : vector<2x128xf32>
    %c0_15 = arith.constant 0 : index
    %c5 = arith.constant 5 : index
    %c0_16 = arith.constant 0 : index
    %29 = vector.load %arg4[%c0_15, %c5, %c0_16] : memref<2x13x128xf32, #tpu.memory_space<vmem>>, vector<2x1x128xf32>
    %30 = vector.shape_cast %29 : vector<2x1x128xf32> to vector<2x128xf32>
    %c5_17 = arith.constant 5 : index
    %31 = memref.load %arg2[%c5_17] : memref<13xf32, #tpu.memory_space<smem>>
    %32 = vector.broadcast %31 : f32 to vector<2x128xf32>
    %33 = arith.mulf %30, %32 : vector<2x128xf32>
    %34 = arith.addf %28, %33 : vector<2x128xf32>
    %c0_18 = arith.constant 0 : index
    %c6 = arith.constant 6 : index
    %c0_19 = arith.constant 0 : index
    %35 = vector.load %arg4[%c0_18, %c6, %c0_19] : memref<2x13x128xf32, #tpu.memory_space<vmem>>, vector<2x1x128xf32>
    %36 = vector.shape_cast %35 : vector<2x1x128xf32> to vector<2x128xf32>
    %c6_20 = arith.constant 6 : index
    %37 = memref.load %arg2[%c6_20] : memref<13xf32, #tpu.memory_space<smem>>
    %38 = vector.broadcast %37 : f32 to vector<2x128xf32>
    %39 = arith.mulf %36, %38 : vector<2x128xf32>
    %40 = arith.addf %34, %39 : vector<2x128xf32>
    %c0_21 = arith.constant 0 : index
    %c7 = arith.constant 7 : index
    %c0_22 = arith.constant 0 : index
    %41 = vector.load %arg4[%c0_21, %c7, %c0_22] : memref<2x13x128xf32, #tpu.memory_space<vmem>>, vector<2x1x128xf32>
    %42 = vector.shape_cast %41 : vector<2x1x128xf32> to vector<2x128xf32>
    %c7_23 = arith.constant 7 : index
    %43 = memref.load %arg2[%c7_23] : memref<13xf32, #tpu.memory_space<smem>>
    %44 = vector.broadcast %43 : f32 to vector<2x128xf32>
    %45 = arith.mulf %42, %44 : vector<2x128xf32>
    %46 = arith.addf %40, %45 : vector<2x128xf32>
    %c0_24 = arith.constant 0 : index
    %c8 = arith.constant 8 : index
    %c0_25 = arith.constant 0 : index
    %47 = vector.load %arg4[%c0_24, %c8, %c0_25] : memref<2x13x128xf32, #tpu.memory_space<vmem>>, vector<2x1x128xf32>
    %48 = vector.shape_cast %47 : vector<2x1x128xf32> to vector<2x128xf32>
    %c8_26 = arith.constant 8 : index
    %49 = memref.load %arg2[%c8_26] : memref<13xf32, #tpu.memory_space<smem>>
    %50 = vector.broadcast %49 : f32 to vector<2x128xf32>
    %51 = arith.mulf %48, %50 : vector<2x128xf32>
    %52 = arith.addf %46, %51 : vector<2x128xf32>
    %c0_27 = arith.constant 0 : index
    %c9 = arith.constant 9 : index
    %c0_28 = arith.constant 0 : index
    %53 = vector.load %arg4[%c0_27, %c9, %c0_28] : memref<2x13x128xf32, #tpu.memory_space<vmem>>, vector<2x1x128xf32>
    %54 = vector.shape_cast %53 : vector<2x1x128xf32> to vector<2x128xf32>
    %c9_29 = arith.constant 9 : index
    %55 = memref.load %arg2[%c9_29] : memref<13xf32, #tpu.memory_space<smem>>
    %56 = vector.broadcast %55 : f32 to vector<2x128xf32>
    %57 = arith.mulf %54, %56 : vector<2x128xf32>
    %58 = arith.addf %52, %57 : vector<2x128xf32>
    %c0_30 = arith.constant 0 : index
    %c10 = arith.constant 10 : index
    %c0_31 = arith.constant 0 : index
    %59 = vector.load %arg4[%c0_30, %c10, %c0_31] : memref<2x13x128xf32, #tpu.memory_space<vmem>>, vector<2x1x128xf32>
    %60 = vector.shape_cast %59 : vector<2x1x128xf32> to vector<2x128xf32>
    %c10_32 = arith.constant 10 : index
    %61 = memref.load %arg2[%c10_32] : memref<13xf32, #tpu.memory_space<smem>>
    %62 = vector.broadcast %61 : f32 to vector<2x128xf32>
    %63 = arith.mulf %60, %62 : vector<2x128xf32>
    %64 = arith.addf %58, %63 : vector<2x128xf32>
    %c0_33 = arith.constant 0 : index
    %c11 = arith.constant 11 : index
    %c0_34 = arith.constant 0 : index
    %65 = vector.load %arg4[%c0_33, %c11, %c0_34] : memref<2x13x128xf32, #tpu.memory_space<vmem>>, vector<2x1x128xf32>
    %66 = vector.shape_cast %65 : vector<2x1x128xf32> to vector<2x128xf32>
    %c11_35 = arith.constant 11 : index
    %67 = memref.load %arg2[%c11_35] : memref<13xf32, #tpu.memory_space<smem>>
    %68 = vector.broadcast %67 : f32 to vector<2x128xf32>
    %69 = arith.mulf %66, %68 : vector<2x128xf32>
    %70 = arith.addf %64, %69 : vector<2x128xf32>
    %c0_36 = arith.constant 0 : index
    %c12 = arith.constant 12 : index
    %c0_37 = arith.constant 0 : index
    %71 = vector.load %arg4[%c0_36, %c12, %c0_37] : memref<2x13x128xf32, #tpu.memory_space<vmem>>, vector<2x1x128xf32>
    %72 = vector.shape_cast %71 : vector<2x1x128xf32> to vector<2x128xf32>
    %c12_38 = arith.constant 12 : index
    %73 = memref.load %arg2[%c12_38] : memref<13xf32, #tpu.memory_space<smem>>
    %74 = vector.broadcast %73 : f32 to vector<2x128xf32>
    %75 = arith.mulf %72, %74 : vector<2x128xf32>
    %76 = arith.addf %70, %75 : vector<2x128xf32>
    %c0_39 = arith.constant 0 : index
    %77 = memref.load %arg3[%c0_39] : memref<1xf32, #tpu.memory_space<smem>>
    %78 = vector.broadcast %77 : f32 to vector<2x128xf32>
    %79 = arith.addf %76, %78 : vector<2x128xf32>
    %c0_40 = arith.constant 0 : index
    %c0_41 = arith.constant 0 : index
    %80 = vector.load %arg5[%c0_40, %c0_41] : memref<2x128xf32, #tpu.memory_space<vmem>>, vector<2x128xf32>
    tpu.vector_store %arg5[%c0_40, %c0_41], %79 {strides = array<i32>} : memref<2x128xf32, #tpu.memory_space<vmem>>, vector<2x128xf32>,
    return
  }
  func.func @transform_0(%arg0: i32, %arg1: i32) -> i32 {
    %c0_i32 = arith.constant 0 : i32
    %c0_i32_0 = arith.constant 0 : i32
    return %c0_i32 : i32
  }
  func.func @transform_1(%arg0: i32, %arg1: i32) -> i32 {
    %c0_i32 = arith.constant 0 : i32
    %c0_i32_0 = arith.constant 0 : i32
    return %c0_i32 : i32
  }
  func.func @transform_2(%arg0: i32, %arg1: i32) -> (i32, i32, i32) {
    %c0_i32 = arith.constant 0 : i32
    %c0_i32_0 = arith.constant 0 : i32
    return %arg0, %c0_i32, %arg1 : i32, i32, i32
  }
  func.func @transform_3(%arg0: i32, %arg1: i32) -> (i32, i32) {
    %c0_i32 = arith.constant 0 : i32
    return %arg0, %arg1 : i32, i32
  }
}

</mosaic_0001>

<bundles_post_ra>
// kernel: weighted_aggregator.1
= control target key start
LH: loop header
LB: loop body
LE: loop exit
PB: predicated region body
PF: predicated region fallthrough
CT: control target
= control target key end

     0   :  { %s878_s0 = inlined_call_operand.vmem [shape: f32[13], index: 0, kind: input, shape index: {}]   ;;  %s879_s1 = inlined_call_operand.<no memory space> [shape: f32[1], index: 1, kind: input, shape index: {}]   ;;  %s880_s2 = inlined_call_operand.vmem [shape: f32[2,13,512], index: 2, kind: input, shape index: {}]   ;;  %s881_s3 = inlined_call_operand.hbm [shape: f32[2,512], index: 3, kind: output, shape index: {}]  }
   0x1   :  { %8 = sst [smem:[#allocation2]] %s879_s1 }
   0x2   :  { %9 = vsyncpa [#allocation5], 0 }
   0x3   :  { %10 = vsyncpa [#allocation4], 0 }
   0x4   :  { %12 = vsyncpa [#allocation4 + $0x1], 0  ;;  %s684_s14 = smov 0   ;;  %s686_s15 = smov 0  }
   0x5   :  { %s688_s16 = smov 0   ;;  %s690_s17 = smov 0  }
   0x6   :  { %s692_s18 = smov 0   ;;  %s694_s19 = smov 0  }
   0x7 LB: > { %s469_s1 = sadd.s32 4294967295, %s657_s19   ;;  %s470_s20 = sadd.s32 4294967294, %s657_s19   ;;  %s657_s19 = sphi %s694_s19, %s18_s19   ;;  %s653_s18 = sphi %s692_s18, %s894_s18   ;;  %s649_s17 = sphi %s690_s17, %s893_s17   ;;  %s645_s16 = sphi %s688_s16, %s892_s16   ;;  %s641_s15 = sphi %s686_s15, %s891_s15   ;;  %s637_s14 = sphi %s684_s14, %s890_s14  }
   0x8   : > { %s27_s21 = sadd.s32 1, %s653_s18  ;;  %s81_s22 = sadd.s32 1, %s645_s16 }
   0x9   : > { %p28_p0 = scmp.ge.s32.totalorder %s27_s21, 4  ;;  %p88_p1 = scmp.ne.s32.totalorder %s645_s16, %s641_s15 }
   0xa   : > { %p89_p2 = scmp.eq.s32.totalorder %s657_s19, 0  ;;  %p120_p3 = scmp.eq.s32.totalorder %s469_s1, 3 }
   0xb   : > { %s896_s21 = smov (%p28_p0, %s27_s21), 0  ;;  %p125_p6 = scmp.ne.s32.totalorder %s641_s15, %s637_s14 }
   0xc   : > { %p723_p4 = por %p89_p2, %p88_p1  ;;  %p727_p5 = por %p120_p3, %p88_p1 }
   0xd   : > { %s77_s25 = ssub.s32 %s653_s18, %s896_s21  ;;  %p126_p8 = scmp.eq.s32.totalorder %s470_s20, 3 }
   0xe   : > { %s884_s24 = scalar_select %p727_p5, 1, 0 }
   0xf   : > { %p79_p7 = scmp.eq.s32.totalorder %s77_s25, 0  ;;  %p471_p9 = scmp.ge.s32.totalorder %s657_s19, 1 }
  0x10   : > { %p133_p10 = scmp.lt.s32.totalorder %s657_s19, 5  ;;  %p740_p11 = por %p126_p8, %p125_p6 }
  0x11   : > { %s738_s26 = scalar_select %p79_p7, %s645_s16, %s81_s22  }
  0x12   : > { %s885_s27 = scalar_select %p740_p11, 1, 0 }
  0x13   : > { %p744_p12 = pnand %p471_p9, %p133_p10  ;;  %p748_p13 = scmp.eq.s32.totalorder %s469_s1, 0 }
  0x14   : > { %s146_s5 = sshll.u32 %s878_s0, 4  ;;  %s147_s5 = int_to_ptr.vmem [resolvable:$true] %s146_s5 }
  0x15   : > { %p502_p0 = pneg %p744_p12  ;;  %s562_s6 = scalar_lea.vmem %s147_s5, 16 }
  0x16   : > { %p563_p2 = scmp.ne.s32.totalorder %s147_s5, %s562_s6  ;;  %p570_p8 = scmp.lt.s32.totalorder %s147_s5, %s147_s5 }
  0x17   : > { %p503_p1 = pnand %p748_p13, %p502_p0  ;;  %p571_p9 = scmp.lt.s32.totalorder %s562_s6, %s562_s6 }
  0x19   : > { %p564_p3 = pneg %p503_p1  ;;  %p572_p10 = por %p571_p9, %p570_p8 }
  0x1b   : > { %p565_p6 = pnand %p564_p3, %p563_p2 }
  0x1d   : > { %p566_p7 = pneg %p565_p6 }
  0x1f   : > { %p573_p11 = pnand %p572_p10, %p566_p7 }
  0x21   : > { %576 = shalt.err (!%p573_p11)
}
  0x22   : > { %s659_s7 = smov [#allocation3]   ;;  %p473_p5 = scmp.ge.s32.totalorder %s657_s19, 4 }
  0x23   : > { %505 = dma.vmem_to_smem (!%p503_p1), %s147_s5, 16, %s659_s7, [#allocation5]  }
  0x24   : > { %156 = sbr.rel (%p473_p5) target bundleno = 49 (0x31), region = 24 }
  0x29   : > { %159 = sbr.rel (!%p723_p4) target bundleno = 49 (0x31), region = 28  ;;  %s161_s8 = sand.u32 (%p723_p4), 1, %s645_s16  }
  0x2a   : > { %s475_s9 = sshll.u32 (%p723_p4), %s653_s18, 3  ;;  %s474_s10 = sshll.u32 (%p723_p4), %s161_s8, 5 }
  0x2b   : > { %s168_s13 = scalar_lea.vmem (%p723_p4), %s880_s2, %s475_s9  ;;  %s163_s1 = scalar_lea.vmem (%p723_p4), [#allocation6], %s474_s10 }
  0x2c   : > { %v203_v0 = vld [vmem:[%s168_s13] sm:$0xff] (%p723_p4) }
  0x2d   : > { %v205_v1 = vld [vmem:[%s168_s13 + $0x20] sm:$0xff] (%p723_p4)  ;;  %204 = vst [vmem:[%s163_s1] sm:$0xff] (%p723_p4), %v203_v0 }
  0x2e   : > { %v207_v2 = vld [vmem:[%s168_s13 + $0x40] sm:$0xff]  ;;  %206 = vst [vmem:[%s163_s1 + $0x8] sm:$0xff] %v205_v1 }
  0x2f   : > { %208 = vst [vmem:[%s163_s1 + $0x10] sm:$0xff] %v207_v2  ;;  %v209_v3 = vld [vmem:[%s168_s13 + $0x60] sm:$0xff] }
  0x30   : > { %210 = vst [vmem:[%s163_s1 + $0x18] sm:$0xff] %v209_v3 }
  0x31 PF: > { %219 = sbr.rel (%p744_p12) target bundleno = 111 (0x6f), region = 66 }
  0x36   : > { %628 = dma.done.wait (%p748_p13), [#allocation5], 16  }
  0x37   : > { %630 = vsyncadd (%p748_p13), [#allocation5], 4294967280  ;;  %s774_s20 = sand.u32 1, %s641_s15  }
  0x38   : > { %s478_s22 = sshll.u32 %s774_s20, 5 }
  0x39   : > { %s777_s23 = scalar_lea.vmem [#allocation6], %s478_s22 }
  0x3a   : > { %232 = sfence }
  0x3b   : > { %s253_s25 = sld [smem:[#allocation3]]  ;;  %v251_v4 = vld [vmem:[%s777_s23] sm:$0x1]  ;;  %v252_v5 = vld [vmem:[%s777_s23 + $0x10] sm:$0x1]  ;;  %s479_s1 = sshll.u32 %s774_s20, 1 }
  0x3c   : > { %s480_s28 = sld [smem:[#allocation3 + $0x1]]  ;;  %v257_v6 = vld [vmem:[%s777_s23 + $0x1] sm:$0x1]  ;;  %v258_v7 = vld [vmem:[%s777_s23 + $0x11] sm:$0x1]  ;;  %s249_s22 = scalar_lea.vmem [#allocation7], %s479_s1 }
  0x3d   : > { %s481_s30 = sld [smem:[#allocation3 + $0x2]]  ;;  %v265_v9 = vld [vmem:[%s777_s23 + $0x2] sm:$0x1]  ;;  %v266_v10 = vld [vmem:[%s777_s23 + $0x12] sm:$0x1]  ;;  %vm360_vm0 = vcmask 1041409  }
  0x3e   : > { %s482_s29 = sld [smem:[#allocation3 + $0x3]]  ;;  %v273_v14 = vld [vmem:[%s777_s23 + $0x3] sm:$0x1]  ;;  %v274_v15 = vld [vmem:[%s777_s23 + $0x13] sm:$0x1]  ;;  %p888_p5 = scmp.ne.s32.totalorder %s884_s24, 0 }
  0x3f   : > { %s781_s4 = sld [smem:[#allocation3 + $0x4]]  ;;  %v281_v22 = vld [vmem:[%s777_s23 + $0x4] sm:$0x1]  ;;  %v282_v23 = vld [vmem:[%s777_s23 + $0x14] sm:$0x1] }
  0x40   : > { %s785_s5 = sld [smem:[#allocation3 + $0x5]]  ;;  %v289_v29 = vld [vmem:[%s777_s23 + $0x5] sm:$0x1]  ;;  %v290_v30 = vld [vmem:[%s777_s23 + $0x15] sm:$0x1] }
  0x41   : > { %v254_v8 = vstv %s253_s25  ;;  %s789_s6 = sld [smem:[#allocation3 + $0x6]]  ;;  %v297_v36 = vld [vmem:[%s777_s23 + $0x6] sm:$0x1]  ;;  %v298_v37 = vld [vmem:[%s777_s23 + $0x16] sm:$0x1]  ;;  %s493_s25 = sshll.u32 %s649_s17, 5 }
  0x42   : > { %v255_v11 = vmul.f32 %v254_v8, %v251_v4  ;;  %v256_v12 = vmul.f32 %v254_v8, %v252_v5  ;;  %v260_v13 = vstv %s480_s28  ;;  %s793_s7 = sld [smem:[#allocation3 + $0x7]]  ;;  %v305_v43 = vld [vmem:[%s777_s23 + $0x7] sm:$0x1]  ;;  %v306_v44 = vld [vmem:[%s777_s23 + $0x17] sm:$0x1]  ;;  %s660_s17 = smov [#allocation7]  }
  0x43   : > { %v261_v16 = vmul.f32 %v260_v13, %v257_v6  ;;  %v262_v17 = vmul.f32 %v260_v13, %v258_v7  ;;  %v268_v18 = vstv %s481_s30  ;;  %s797_s8 = sld [smem:[#allocation3 + $0x8]]  ;;  %v313_v50 = vld [vmem:[%s777_s23 + $0x8] sm:$0x1]  ;;  %v314_v51 = vld [vmem:[%s777_s23 + $0x18] sm:$0x1] }
  0x44   : > { %v269_v19 = vmul.f32 %v268_v18, %v265_v9  ;;  %v270_v20 = vmul.f32 %v268_v18, %v266_v10  ;;  %v276_v21 = vstv %s482_s29  ;;  %s803_s9 = sld [smem:[#allocation3 + $0x9]]  ;;  %v321_v57 = vld [vmem:[%s777_s23 + $0x9] sm:$0x1]  ;;  %v322_v58 = vld [vmem:[%s777_s23 + $0x19] sm:$0x1]  ;;  %s378_s29 = scalar_lea.hbm %s881_s3, %s493_s25 }
  0x45   : > { %v263_v24 = vadd.f32 %v261_v16, %v255_v11  ;;  %v264_v25 = vadd.f32 %v262_v17, %v256_v12  ;;  %v277_v26 = vmul.f32 %v276_v21, %v273_v14  ;;  %v278_v27 = vmul.f32 %v276_v21, %v274_v15  ;;  %s808_s10 = sld [smem:[#allocation3 + $0xa]]  ;;  %v329_v0 = vld [vmem:[%s777_s23 + $0xa] sm:$0x1]  ;;  %v330_v1 = vld [vmem:[%s777_s23 + $0x1a] sm:$0x1] }
  0x46   : > { %v284_v28 = vstv %s781_s4  ;;  %v292_v31 = vstv %s785_s5  ;;  %s813_s11 = sld [smem:[#allocation3 + $0xb]]  ;;  %v337_v7 = vld [vmem:[%s777_s23 + $0xb] sm:$0x1]  ;;  %v338_v8 = vld [vmem:[%s777_s23 + $0x1b] sm:$0x1]  ;;  %s365_s4 = scalar_lea.sflag [#allocation4], %s774_s20 }
  0x47   : > { %v271_v32 = vadd.f32 %v269_v19, %v263_v24  ;;  %v272_v33 = vadd.f32 %v270_v20, %v264_v25  ;;  %v285_v34 = vmul.f32 %v284_v28, %v281_v22  ;;  %v286_v35 = vmul.f32 %v284_v28, %v282_v23  ;;  %s818_s12 = sld [smem:[#allocation3 + $0xc]]  ;;  %v345_v14 = vld [vmem:[%s777_s23 + $0xc] sm:$0x1]  ;;  %v346_v15 = vld [vmem:[%s777_s23 + $0x1c] sm:$0x1]  ;;  %s380_s23 = sshll.u32 %s249_s22, 4  ;;  %s834_s23 = int_to_ptr.vmem [resolvable:$true] %s380_s23 }
  0x48   : > { %v300_v38 = vstv %s789_s6  ;;  %v293_v41 = vmul.f32 %v292_v31, %v289_v29  ;;  %v294_v42 = vmul.f32 %v292_v31, %v290_v30  ;;  %v308_v45 = vstv %s793_s7  ;;  %s353_s13 = sld [smem:[#allocation2]]  ;;  %s577_s5 = scalar_lea.vmem %s834_s23, 32 }
  0x49   : > { %v279_v39 = vadd.f32 %v277_v26, %v271_v32  ;;  %v280_v40 = vadd.f32 %v278_v27, %v272_v33  ;;  %v301_v48 = vmul.f32 %v300_v38, %v297_v36  ;;  %v302_v49 = vmul.f32 %v300_v38, %v298_v37  ;;  %p578_p4 = scmp.ne.s32.totalorder %s834_s23, %s577_s5  ;;  %s581_s6 = sshll.u32 %s660_s17, 4  ;;  %s582_s6 = int_to_ptr.vmem [resolvable:$false] %s581_s6 }
  0x4a   : > { %v316_v52 = vstv %s797_s8  ;;  %v309_v55 = vmul.f32 %v308_v45, %v305_v43  ;;  %v310_v56 = vmul.f32 %v308_v45, %v306_v44  ;;  %v324_v59 = vstv %s803_s9  ;;  %s583_s7 = scalar_lea.vmem %s582_s6, 64  ;;  %p584_p13 = scmp.lt.s32.totalorder %s834_s23, %s582_s6 }
  0x4b   : > { %v287_v46 = vadd.f32 %v285_v34, %v279_v39  ;;  %v288_v47 = vadd.f32 %v286_v35, %v280_v40  ;;  %v317_v62 = vmul.f32 %v316_v52, %v313_v50  ;;  %v318_v63 = vmul.f32 %v316_v52, %v314_v51  ;;  %p579_p11 = pnand %p578_p4, %p888_p5  ;;  %p585_p0 = scmp.lt.s32.totalorder %s583_s7, %s577_s5 }
  0x4c   : > { %v332_v2 = vstv %s808_s10  ;;  %v325_v5 = vmul.f32 %v324_v59, %v321_v57  ;;  %v326_v6 = vmul.f32 %v324_v59, %v322_v58  ;;  %v340_v9 = vstv %s813_s11 }
  0x4d   : > { %v295_v53 = vadd.f32 %v293_v41, %v287_v46  ;;  %v296_v54 = vadd.f32 %v294_v42, %v288_v47  ;;  %v333_v12 = vmul.f32 %v332_v2, %v329_v0  ;;  %v334_v13 = vmul.f32 %v332_v2, %v330_v1  ;;  %p580_p12 = pneg %p579_p11  ;;  %p586_p1 = por %p585_p0, %p584_p13 }
  0x4e   : > { %v348_v16 = vstv %s818_s12  ;;  %v341_v19 = vmul.f32 %v340_v9, %v337_v7  ;;  %v342_v20 = vmul.f32 %v340_v9, %v338_v8  ;;  %v354_v27 = vstv %s353_s13 }
  0x4f   : > { %v303_v60 = vadd.f32 %v301_v48, %v295_v53  ;;  %v304_v61 = vadd.f32 %v302_v49, %v296_v54  ;;  %v349_v23 = vmul.f32 %v348_v16, %v345_v14  ;;  %v350_v24 = vmul.f32 %v348_v16, %v346_v15  ;;  %p587_p2 = pnand %p586_p1, %p580_p12 }
  0x51   : > { %v311_v3 = vadd.f32 %v309_v55, %v303_v60  ;;  %v312_v4 = vadd.f32 %v310_v56, %v304_v61 }
  0x53   : > { %v319_v10 = vadd.f32 %v317_v62, %v311_v3  ;;  %v320_v11 = vadd.f32 %v318_v63, %v312_v4 }
  0x55   : > { %v327_v17 = vadd.f32 %v325_v5, %v319_v10  ;;  %v328_v18 = vadd.f32 %v326_v6, %v320_v11 }
  0x57   : > { %v335_v21 = vadd.f32 %v333_v12, %v327_v17  ;;  %v336_v22 = vadd.f32 %v334_v13, %v328_v18 }
  0x59   : > { %v343_v25 = vadd.f32 %v341_v19, %v335_v21  ;;  %v344_v26 = vadd.f32 %v342_v20, %v336_v22 }
  0x5b   : > { %v351_v28 = vadd.f32 %v349_v23, %v343_v25  ;;  %v352_v29 = vadd.f32 %v350_v24, %v344_v26 }
  0x5d   : > { %v355_v30 = vadd.f32 %v354_v27, %v351_v28  ;;  %v356_v31 = vadd.f32 %v354_v27, %v352_v29 }
  0x5f   : > { %v359_v32 = vrot.slane %v356_v31, 7 }
  0x61   : > { %v361_v33 = vsel %vm360_vm0, %v359_v32, %v355_v30 }
  0x62   : > { %363 = vst [vmem:[%s249_s22] sm:$0x3] %v361_v33 }
  0x63   : > { %590 = shalt.err (!%p587_p2)
}
  0x64   : > { %s591_s8 = scalar_lea.hbm %s378_s29, 32  ;;  %s595_s10 = scalar_lea.hbm %s881_s3, 128 }
  0x65   : > { %p592_p3 = scmp.ne.s32.totalorder %s378_s29, %s591_s8  ;;  %p596_p8 = scmp.lt.s32.totalorder %s378_s29, %s881_s3 }
  0x66   : > { %p597_p9 = scmp.lt.s32.totalorder %s595_s10, %s591_s8 }
  0x67   : > { %p593_p6 = pnand %p592_p3, %p888_p5 }
  0x68   : > { %p598_p10 = por %p597_p9, %p596_p8 }
  0x69   : > { %p594_p7 = pneg %p593_p6 }
  0x6b   : > { %p599_p4 = pnand %p598_p10, %p594_p7 }
  0x6d   : > { %602 = shalt.err (!%p599_p4)
}
  0x6e   : > { %500 = dma.vmem_to_hbm [thread:$0]  (%p888_p5), %s834_s23, 32, %s378_s29, %s365_s4  }
  0x6f PF: > { %p512_p11 = scmp.ge.s32.totalorder %s657_s19, 2  ;;  %s392_s13 = sand.u32 1, %s637_s14  }
  0x70   : > { %p889_p12 = scmp.ne.s32.totalorder %s885_s27, 0  ;;  %s393_s1 = scalar_lea.sflag [#allocation4], %s392_s13 }
  0x72   : > { %p507_p13 = pnand %p512_p11, %p889_p12 }
  0x74   : > { %p508_p0 = pneg %p507_p13 }
  0x76   : > { %632 = dma.done.wait (%p508_p0), %s393_s1, 32  }
  0x77   : > { %634 = vsyncadd (%p508_p0), %s393_s1, 4294967264  ;;  %s18_s19 = sadd.s32 1, %s657_s19   ;;  %s890_s14 = smov %s641_s15 }
  0x78   : > { %p15_p1 = scmp.ge.s32.totalorder %s18_s19, 6   ;;  %s891_s15 = smov %s645_s16 }
  0x79   : > { %s892_s16 = smov %s738_s26  ;;  %s893_s17 = smov %s653_s18 }
  0x7a   : > { %s894_s18 = smov %s896_s21  ;;  %17 = sbr.rel (!%p15_p1) target bundleno = 7 (0x7), region = 115 }
  0x7f   :  { %398 = vsyncpa [#allocation4], 1 }
  0x80   :  { %400 = vsyncpa [#allocation4 + $0x1], 1 }
  0x81   :  { %401 = vsyncpa [#allocation5], 1 }
  0x82   :  { %403 = vsyncpa [#allocation5 + $0x1], 1 }

</bundles_post_ra>
